<compile_context>
chip_gen: v7x
topology: tpu7x:2x2x1
jax: 0.10.0
libtpu: 0.0.40
codegen_flags: <defaults>
</compile_context>

<pallas_src>
import math

import jax
import jax.numpy as jnp
from jax.experimental import pallas as pl
from jax.experimental.pallas import tpu as pltpu

NHEAD = 4
LN_EPS = 1e-5


def _layernorm(x, g, b):
    mu = jnp.mean(x, axis=-1, keepdims=True)
    var = jnp.mean(jnp.square(x - mu), axis=-1, keepdims=True)
    return (x - mu) * jax.lax.rsqrt(var + LN_EPS) * g + b


def _const(shape):
    """Full-array, constant-index BlockSpec for small weights/biases.

    TODO(synk): single-buffer these constant blocks (pipeline_mode=pl.Buffered(1))
    once verified on this jax version; at these shapes all constants total
    < 1 MiB so the double-buffer waste is negligible.
    """
    if len(shape) == 2:
        return pl.BlockSpec(shape, lambda i: (0, 0))
    return pl.BlockSpec(shape, lambda i: (0, 0, 0))


def _round_up(x, m):
    return (x + m - 1) // m * m


def _pick_block(bn, target):
    """Row-block size (multiple of 8) and padded row count for the B*N axis."""
    bn8 = _round_up(bn, 8)
    blk = min(target, bn8)
    # Keep >= 2 grid steps when possible so v7x's 2 TensorCores both get work
    # (harmless on single-TC v5e/v6e).
    if bn8 >= 16:
        blk = min(blk, _round_up((bn8 + 1) // 2, 8))
    return blk, _round_up(bn, blk)


# ---------------------------------------------------------------------------
# Kernel 1 (one-shot, batch-independent): GCNEncoder + FusionAttention value
# projection. Runs once per forward with whole (tiny) arrays in VMEM.
# ---------------------------------------------------------------------------
def gcn_value_kernel(emb_ref, a_ref, gw1_ref, gb1_ref, gw2_ref, gb2_ref,
                     fwv_ref, fbv_ref, v_ref):
    a = a_ref[...]
    h1 = jnp.dot(emb_ref[...], gw1_ref[...], preferred_element_type=jnp.float32)
    h1 = jnp.maximum(jnp.dot(a, h1, preferred_element_type=jnp.float32) + gb1_ref[...], 0.0)
    h2 = jnp.dot(h1, gw2_ref[...], preferred_element_type=jnp.float32)
    h2 = jnp.maximum(jnp.dot(a, h2, preferred_element_type=jnp.float32) + gb2_ref[...], 0.0)
    # FusionAttention value projection; the softmax over a size-1 last axis is
    # identically 1.0, so only the value path of the reference module is live.
    v_ref[...] = jnp.dot(h2, fwv_ref[...], preferred_element_type=jnp.float32) + fbv_ref[...]


# ---------------------------------------------------------------------------
# Kernel 2 (main): proj+pos (wp folded into K/V), last-token MHA + post-norm
# encoder epilogue, fusion add and decoder MLP, gridded over row blocks of the
# flattened B*N axis.
# ---------------------------------------------------------------------------
def fused_forward_kernel(x_ref, v_ref,
                         wp_ref, hlb_ref,
                         wkv_ref, kvb_ref,
                         wq_ref, bq_ref,
                         wo_ref, bo_ref,
                         g1_ref, be1_ref,
                         w1_ref, b1_ref, w2_ref, b2_ref,
                         g2_ref, be2_ref,
                         dw1_ref, db1_ref, dw2_ref, db2_ref,
                         out_ref):
    BLK, T, F = x_ref.shape
    H = wq_ref.shape[1]
    hd = H // NHEAD
    scale = 1.0 / math.sqrt(hd)

    x = x_ref[...]                                            # (BLK, T, F) f32

    # K/V for all tokens with the input projection + positional encoding folded:
    #   kv = (x@wp + bp + pos) @ wkv + bkv == x @ (wp@wkv) + ((bp+pos)@wkv + bkv)
    kv = jnp.dot(x.reshape(BLK * T, F).astype(wkv_ref.dtype), wkv_ref[...],
                 preferred_element_type=jnp.float32)
    kv = kv.reshape(BLK, T, 2 * H) + kvb_ref[...][None, :, :]  # (BLK, T, 2H) f32

    # last-token features (projection + pos): needed for Q and the residual.
    h_last = jnp.dot(x[:, T - 1, :], wp_ref[...],
                     preferred_element_type=jnp.float32) + hlb_ref[...]  # (BLK, H)
    q = jnp.dot(h_last.astype(wq_ref.dtype), wq_ref[...],
                preferred_element_type=jnp.float32) + bq_ref[...]

    # Multi-head attention for the single (last) query row. wo is folded per
    # head into the accumulation, so there is no lane concatenate.
    attn = jnp.zeros((BLK, H), jnp.float32)
    for h in range(NHEAD):
        lo = h * hd
        qh = q[:, lo:lo + hd]                                  # (BLK, hd)
        kh = kv[:, :, lo:lo + hd]                              # (BLK, T, hd)
        vh = kv[:, :, H + lo:H + lo + hd]                      # (BLK, T, hd)
        s = jnp.sum(qh[:, None, :] * kh, axis=-1) * scale      # (BLK, T)
        s = s - jnp.max(s, axis=-1, keepdims=True)
        p = jnp.exp(s)
        p = p * pl.reciprocal(jnp.sum(p, axis=-1, keepdims=True), approx=True)
        ctx = jnp.sum(p[:, :, None] * vh, axis=1)              # (BLK, hd)
        attn = attn + jnp.dot(ctx.astype(wo_ref.dtype), wo_ref[h],
                              preferred_element_type=jnp.float32)
    attn = attn + bo_ref[...]

    # post-norm encoder epilogue (last token only; all ops are per-token).
    y = _layernorm(h_last + attn, g1_ref[...], be1_ref[...])   # (BLK, H) f32
    ff = jnp.maximum(
        jnp.dot(y.astype(w1_ref.dtype), w1_ref[...],
                preferred_element_type=jnp.float32) + b1_ref[...], 0.0)
    ff = jnp.dot(ff.astype(w2_ref.dtype), w2_ref[...],
                 preferred_element_type=jnp.float32) + b2_ref[...]
    z = _layernorm(y + ff, g2_ref[...], be2_ref[...])

    # FusionAttention (softmax over a size-1 axis == 1): fused = temporal + v.
    fused = z + v_ref[...]

    # decoder MLP
    hdec = jnp.maximum(
        jnp.dot(fused.astype(dw1_ref.dtype), dw1_ref[...],
                preferred_element_type=jnp.float32) + db1_ref[...], 0.0)
    out_ref[...] = jnp.dot(hdec.astype(dw2_ref.dtype), dw2_ref[...],
                           preferred_element_type=jnp.float32) + db2_ref[...]


# ---------------------------------------------------------------------------
# Dense GCN-normalized adjacency with self loops.
# TODO(synk): the scatter-add over dynamic edge indices stays plain-JAX
# preprocessing (no clean tiled Pallas expression at this size).
# ---------------------------------------------------------------------------
def build_gcn_adj(edge_index, edge_weight, num_nodes):
    row, col = edge_index[0], edge_index[1]
    if edge_weight is None:
        edge_weight = jnp.ones(row.shape[0], jnp.float32)
    loop = jnp.arange(num_nodes, dtype=row.dtype)
    row = jnp.concatenate([row, loop])
    col = jnp.concatenate([col, loop])
    w = jnp.concatenate([edge_weight, jnp.ones(num_nodes, jnp.float32)])
    deg = jnp.zeros(num_nodes, jnp.float32).at[col].add(w)
    dinv = jnp.where(deg > 0, 1.0 / jnp.sqrt(deg), 0.0)
    norm = dinv[row] * w * dinv[col]
    return jnp.zeros((num_nodes, num_nodes), jnp.float32).at[col, row].add(norm)


# ---------------------------------------------------------------------------
# Parameters (deterministic synthetic init) and full forward.
# ---------------------------------------------------------------------------
def init_params(key, *, in_channels, graph_feat_dim, trans_hidden, out_channels,
                num_nodes, max_len=100, dff=2048):
    H = trans_hidden
    ks = iter(jax.random.split(key, 64))

    def w(shape):
        s = 1.0 / math.sqrt(shape[0])
        return jax.random.uniform(next(ks), shape, jnp.float32, -s, s)

    def b(n):
        return jnp.zeros((1, n), jnp.float32)

    p = {}
    # TemporalTransformer
    p['wp'] = w((in_channels, H)); p['bp'] = b(H)
    p['pos'] = jax.random.normal(next(ks), (1, max_len, H), jnp.float32)
    p['wq'] = w((H, H)); p['bq'] = b(H)
    p['wk'] = w((H, H)); p['bk'] = b(H)
    p['wv'] = w((H, H)); p['bv'] = b(H)
    p['wo'] = w((H, H)); p['bo'] = b(H)
    p['g1'] = jnp.ones((1, H), jnp.float32); p['be1'] = jnp.zeros((1, H), jnp.float32)
    p['w1'] = w((H, dff)); p['b1'] = b(dff)
    p['w2'] = w((dff, H)); p['b2'] = b(H)
    p['g2'] = jnp.ones((1, H), jnp.float32); p['be2'] = jnp.zeros((1, H), jnp.float32)
    # node embedding + GCNEncoder
    p['node_emb'] = jax.random.normal(next(ks), (num_nodes, graph_feat_dim), jnp.float32)
    p['gw1'] = w((graph_feat_dim, H)); p['gb1'] = b(H)
    p['gw2'] = w((H, H)); p['gb2'] = b(H)
    # FusionAttention: only the value projection is live (softmax over a size-1
    # axis is identically 1, so query/key weights never affect the output).
    p['fwv'] = w((H, H)); p['fbv'] = b(H)
    # decoder
    p['dw1'] = w((H, 64)); p['db1'] = b(64)
    p['dw2'] = w((64, out_channels)); p['db2'] = b(out_channels)
    return p


def spatio_temporal_fusion_net(x_seq, edge_index, edge_weight, params, *, blk_target=256):
    B, T, N, F = x_seq.shape
    H = params['wq'].shape[1]
    hd = H // NHEAD
    dff = params['w1'].shape[1]
    dh = params['dw1'].shape[1]
    out_c = params['dw2'].shape[1]

    # ---- hoisted, batch-independent spatial branch (one-shot pallas_call) ----
    a_hat = build_gcn_adj(edge_index, edge_weight, N)
    v = pl.pallas_call(
        gcn_value_kernel,
        out_shape=jax.ShapeDtypeStruct((N, H), jnp.float32),
    )(params['node_emb'], a_hat,
      params['gw1'], params['gb1'], params['gw2'], params['gb2'],
      params['fwv'], params['fbv'])

    # ---- fold / pre-cast transformer weights (tiny, wrapper-side) ----
    pos = params['pos'][0, :T, :]                               # (T, H)
    wkv = jnp.concatenate([params['wk'], params['wv']], axis=1)  # (H, 2H)
    bkv = jnp.concatenate([params['bk'], params['bv']], axis=1)  # (1, 2H)
    wkv_folded = jnp.dot(params['wp'], wkv).astype(jnp.bfloat16)   # (F, 2H)
    kv_bias = jnp.dot(params['bp'] + pos, wkv) + bkv               # (T, 2H) f32
    hl_bias = params['bp'] + pos[T - 1:T, :]                       # (1, H)  f32
    wq = params['wq'].astype(jnp.bfloat16)
    wo_heads = params['wo'].reshape(NHEAD, hd, H).astype(jnp.bfloat16)
    w1 = params['w1'].astype(jnp.bfloat16)
    w2 = params['w2'].astype(jnp.bfloat16)
    dw1 = params['dw1'].astype(jnp.bfloat16)
    dw2 = params['dw2'].astype(jnp.bfloat16)

    # ---- flatten rows, broadcast fused value per node, pad to block multiple ----
    BN = B * N
    blk, BN_pad = _pick_block(BN, blk_target)
    x = jnp.transpose(x_seq, (0, 2, 1, 3)).reshape(BN, T, F)
    v_rows = jnp.tile(v, (B, 1))                                # row b*N+n -> v[n]
    if BN_pad != BN:
        pad = BN_pad - BN
        x = jnp.pad(x, ((0, pad), (0, 0), (0, 0)))
        v_rows = jnp.pad(v_rows, ((0, pad), (0, 0)))

    # TODO(synk): at blk >= 512 on v7x, pack the (T, F) axes into lanes to cut
    # the lane-padded (blk, T, F=4) input buffer; irrelevant at these sizes.
    in_specs = [
        pl.BlockSpec((blk, T, F), lambda i: (i, 0, 0)),
        pl.BlockSpec((blk, H), lambda i: (i, 0)),
        _const((F, H)), _const((1, H)),                 # wp, hl_bias
        _const((F, 2 * H)), _const((T, 2 * H)),         # wkv_folded, kv_bias
        _const((H, H)), _const((1, H)),                 # wq, bq
        _const((NHEAD, hd, H)), _const((1, H)),         # wo_heads, bo
        _const((1, H)), _const((1, H)),                 # g1, be1
        _const((H, dff)), _const((1, dff)),             # w1, b1
        _const((dff, H)), _const((1, H)),               # w2, b2
        _const((1, H)), _const((1, H)),                 # g2, be2
        _const((H, dh)), _const((1, dh)),               # dw1, db1
        _const((dh, out_c)), _const((1, out_c)),        # dw2, db2
    ]
    out = pl.pallas_call(
        fused_forward_kernel,
        grid=(BN_pad // blk,),
        in_specs=in_specs,
        out_specs=pl.BlockSpec((blk, out_c), lambda i: (i, 0)),
        out_shape=jax.ShapeDtypeStruct((BN_pad, out_c), jnp.float32),
        compiler_params=pltpu.CompilerParams(
            dimension_semantics=("parallel",),
            vmem_limit_bytes=32 * 1024 * 1024,
        ),
    )(x, v_rows,
      params['wp'], hl_bias,
      wkv_folded, kv_bias,
      wq, params['bq'],
      wo_heads, params['bo'],
      params['g1'], params['be1'],
      w1, params['b1'], w2, params['b2'],
      params['g2'], params['be2'],
      dw1, params['db1'], dw2, params['db2'])

    return out[:BN].reshape(B, N, out_c)


if __name__ == "__main__":
    B, T, N, F = 2, 8, 16, 4
    H, Gf, out_c = 32, 16, 1

    key = jax.random.PRNGKey(0)
    kx, kp = jax.random.split(key)
    x_seq = jax.random.normal(kx, (B, T, N, F), jnp.float32)

    # simple bidirectional ring graph over N nodes, edge_weight=None
    src = jnp.arange(N, dtype=jnp.int32)
    dst = (src + 1) % N
    edge_index = jnp.stack([jnp.concatenate([src, dst]),
                            jnp.concatenate([dst, src])], axis=0)

    params = init_params(kp, in_channels=F, graph_feat_dim=Gf, trans_hidden=H,
                         out_channels=out_c, num_nodes=N)

    fwd = jax.jit(spatio_temporal_fusion_net)
    out = fwd(x_seq, edge_index, None, params)
    out = jax.block_until_ready(out)
    assert out.shape == (B, N, out_c)
    assert bool(jnp.all(jnp.isfinite(out)))
    print("KERNEL_OK")
</pallas_src>

<mosaic_0001>
module attributes {stable_mosaic.version = 11 : i64} {
  func.func private @main(%arg0: i32) attributes {dimension_semantics = [#tpu.dimension_semantics<core_parallel>], iteration_bounds = array<i64: 2>, tpu.core_type = #tpu.core_type<sc_scalar_subcore>, window_params = []} {
    return
  }
}

module attributes {stable_mosaic.version = 11 : i64} {
  func.func private @main(%arg0: i32) attributes {dimension_semantics = [#tpu.dimension_semantics<core_parallel>], iteration_bounds = array<i64: 2>, tpu.core_type = #tpu.core_type<sc_scalar_subcore>, window_params = []} {
    return
  }
}

module attributes {stable_mosaic.version = 11 : i64} {
  func.func @fused_forward_kernel(%arg0: i32, %arg1: memref<16x8x4xf32, #tpu.memory_space<vmem>>, %arg2: memref<16x32xf32, #tpu.memory_space<vmem>>, %arg3: memref<4x32xf32, #tpu.memory_space<vmem>>, %arg4: memref<1x32xf32, #tpu.memory_space<vmem>>, %arg5: memref<4x64xbf16, #tpu.memory_space<vmem>>, %arg6: memref<8x64xf32, #tpu.memory_space<vmem>>, %arg7: memref<32x32xbf16, #tpu.memory_space<vmem>>, %arg8: memref<1x32xf32, #tpu.memory_space<vmem>>, %arg9: memref<4x8x32xbf16, #tpu.memory_space<vmem>>, %arg10: memref<1x32xf32, #tpu.memory_space<vmem>>, %arg11: memref<1x32xf32, #tpu.memory_space<vmem>>, %arg12: memref<1x32xf32, #tpu.memory_space<vmem>>, %arg13: memref<32x2048xbf16, #tpu.memory_space<vmem>>, %arg14: memref<1x2048xf32, #tpu.memory_space<vmem>>, %arg15: memref<2048x32xbf16, #tpu.memory_space<vmem>>, %arg16: memref<1x32xf32, #tpu.memory_space<vmem>>, %arg17: memref<1x32xf32, #tpu.memory_space<vmem>>, %arg18: memref<1x32xf32, #tpu.memory_space<vmem>>, %arg19: memref<32x64xbf16, #tpu.memory_space<vmem>>, %arg20: memref<1x64xf32, #tpu.memory_space<vmem>>, %arg21: memref<64x1xbf16, #tpu.memory_space<vmem>>, %arg22: memref<1x1xf32, #tpu.memory_space<vmem>>, %arg23: memref<16x1xf32, #tpu.memory_space<vmem>>) attributes {dimension_semantics = [#tpu.dimension_semantics<parallel>], iteration_bounds = array<i64: 2>, scalar_prefetch = 0 : i64, scratch_operands = 0 : i64, tpu.core_type = #tpu.core_type<tc>, window_params = [{transform_indices = @transform_0, window_bounds = array<i64: 16, 8, 4>}, {transform_indices = @transform_1, window_bounds = array<i64: 16, 32>}, {pipeline_mode = #tpu.pipeline_mode<synchronous>, transform_indices = @transform_2, window_bounds = array<i64: 4, 32>}, {pipeline_mode = #tpu.pipeline_mode<synchronous>, transform_indices = @transform_3, window_bounds = array<i64: 1, 32>}, {pipeline_mode = #tpu.pipeline_mode<synchronous>, transform_indices = @transform_4, window_bounds = array<i64: 4, 64>}, {pipeline_mode = #tpu.pipeline_mode<synchronous>, transform_indices = @transform_5, window_bounds = array<i64: 8, 64>}, {pipeline_mode = #tpu.pipeline_mode<synchronous>, transform_indices = @transform_6, window_bounds = array<i64: 32, 32>}, {pipeline_mode = #tpu.pipeline_mode<synchronous>, transform_indices = @transform_7, window_bounds = array<i64: 1, 32>}, {pipeline_mode = #tpu.pipeline_mode<synchronous>, transform_indices = @transform_8, window_bounds = array<i64: 4, 8, 32>}, {pipeline_mode = #tpu.pipeline_mode<synchronous>, transform_indices = @transform_9, window_bounds = array<i64: 1, 32>}, {pipeline_mode = #tpu.pipeline_mode<synchronous>, transform_indices = @transform_10, window_bounds = array<i64: 1, 32>}, {pipeline_mode = #tpu.pipeline_mode<synchronous>, transform_indices = @transform_11, window_bounds = array<i64: 1, 32>}, {pipeline_mode = #tpu.pipeline_mode<synchronous>, transform_indices = @transform_12, window_bounds = array<i64: 32, 2048>}, {pipeline_mode = #tpu.pipeline_mode<synchronous>, transform_indices = @transform_13, window_bounds = array<i64: 1, 2048>}, {pipeline_mode = #tpu.pipeline_mode<synchronous>, transform_indices = @transform_14, window_bounds = array<i64: 2048, 32>}, {pipeline_mode = #tpu.pipeline_mode<synchronous>, transform_indices = @transform_15, window_bounds = array<i64: 1, 32>}, {pipeline_mode = #tpu.pipeline_mode<synchronous>, transform_indices = @transform_16, window_bounds = array<i64: 1, 32>}, {pipeline_mode = #tpu.pipeline_mode<synchronous>, transform_indices = @transform_17, window_bounds = array<i64: 1, 32>}, {pipeline_mode = #tpu.pipeline_mode<synchronous>, transform_indices = @transform_18, window_bounds = array<i64: 32, 64>}, {pipeline_mode = #tpu.pipeline_mode<synchronous>, transform_indices = @transform_19, window_bounds = array<i64: 1, 64>}, {pipeline_mode = #tpu.pipeline_mode<synchronous>, transform_indices = @transform_20, window_bounds = array<i64: 64, 1>}, {pipeline_mode = #tpu.pipeline_mode<synchronous>, transform_indices = @transform_21, window_bounds = array<i64: 1, 1>}, {transform_indices = @transform_22, window_bounds = array<i64: 16, 1>}]} {
    %c0 = arith.constant 0 : index
    %c0_0 = arith.constant 0 : index
    %c0_1 = arith.constant 0 : index
    %0 = vector.load %arg1[%c0, %c0_0, %c0_1] : memref<16x8x4xf32, #tpu.memory_space<vmem>>, vector<16x8x4xf32>
    %1 = vector.shape_cast %0 : vector<16x8x4xf32> to vector<128x4xf32>
    %2 = arith.truncf %1 : vector<128x4xf32> to vector<128x4xbf16>
    %c0_2 = arith.constant 0 : index
    %c0_3 = arith.constant 0 : index
    %3 = vector.load %arg5[%c0_2, %c0_3] : memref<4x64xbf16, #tpu.memory_space<vmem>>, vector<4x64xbf16>
    %cst = arith.constant dense<0.000000e+00> : vector<128x64xf32>
    %4 = tpu.matmul %2, %3, %cst {dimension_numbers = #tpu.dot_dimension_numbers<[1], [0], [0], [1], [0, 0, 1, 1], [], []>} : vector<128x4xbf16>, vector<4x64xbf16>, vector<128x64xf32> -> vector<128x64xf32>
    %5 = vector.shape_cast %4 : vector<128x64xf32> to vector<16x8x64xf32>
    %c0_4 = arith.constant 0 : index
    %c0_5 = arith.constant 0 : index
    %6 = vector.load %arg6[%c0_4, %c0_5] : memref<8x64xf32, #tpu.memory_space<vmem>>, vector<8x64xf32>
    %7 = vector.shape_cast %6 : vector<8x64xf32> to vector<1x8x64xf32>
    %8 = vector.broadcast %7 : vector<1x8x64xf32> to vector<16x8x64xf32>
    %9 = arith.addf %5, %8 : vector<16x8x64xf32>
    %10 = vector.extract_strided_slice %0 {offsets = [0, 7, 0], sizes = [16, 1, 4], strides = [1, 1, 1]} : vector<16x8x4xf32> to vector<16x1x4xf32>
    %11 = vector.shape_cast %10 : vector<16x1x4xf32> to vector<16x4xf32>
    %c0_6 = arith.constant 0 : index
    %c0_7 = arith.constant 0 : index
    %12 = vector.load %arg3[%c0_6, %c0_7] : memref<4x32xf32, #tpu.memory_space<vmem>>, vector<4x32xf32>
    %cst_8 = arith.constant dense<0.000000e+00> : vector<16x32xf32>
    %13 = tpu.matmul %11, %12, %cst_8 {dimension_numbers = #tpu.dot_dimension_numbers<[1], [0], [0], [1], [0, 0, 1, 1], [], []>} : vector<16x4xf32>, vector<4x32xf32>, vector<16x32xf32> -> vector<16x32xf32>
    %c0_9 = arith.constant 0 : index
    %c0_10 = arith.constant 0 : index
    %14 = vector.load %arg4[%c0_9, %c0_10] : memref<1x32xf32, #tpu.memory_space<vmem>>, vector<1x32xf32>
    %15 = vector.broadcast %14 : vector<1x32xf32> to vector<16x32xf32>
    %16 = arith.addf %13, %15 : vector<16x32xf32>
    %17 = arith.truncf %16 : vector<16x32xf32> to vector<16x32xbf16>
    %c0_11 = arith.constant 0 : index
    %c0_12 = arith.constant 0 : index
    %18 = vector.load %arg7[%c0_11, %c0_12] : memref<32x32xbf16, #tpu.memory_space<vmem>>, vector<32x32xbf16>
    %cst_13 = arith.constant dense<0.000000e+00> : vector<16x32xf32>
    %19 = tpu.matmul %17, %18, %cst_13 {dimension_numbers = #tpu.dot_dimension_numbers<[1], [0], [0], [1], [0, 0, 1, 1], [], []>} : vector<16x32xbf16>, vector<32x32xbf16>, vector<16x32xf32> -> vector<16x32xf32>
    %c0_14 = arith.constant 0 : index
    %c0_15 = arith.constant 0 : index
    %20 = vector.load %arg8[%c0_14, %c0_15] : memref<1x32xf32, #tpu.memory_space<vmem>>, vector<1x32xf32>
    %21 = vector.broadcast %20 : vector<1x32xf32> to vector<16x32xf32>
    %22 = arith.addf %19, %21 : vector<16x32xf32>
    %cst_16 = arith.constant 0.000000e+00 : f32
    %23 = vector.broadcast %cst_16 : f32 to vector<16x32xf32>
    %24 = vector.extract_strided_slice %22 {offsets = [0, 0], sizes = [16, 8], strides = [1, 1]} : vector<16x32xf32> to vector<16x8xf32>
    %25 = vector.extract_strided_slice %9 {offsets = [0, 0, 0], sizes = [16, 8, 8], strides = [1, 1, 1]} : vector<16x8x64xf32> to vector<16x8x8xf32>
    %26 = vector.extract_strided_slice %9 {offsets = [0, 0, 32], sizes = [16, 8, 8], strides = [1, 1, 1]} : vector<16x8x64xf32> to vector<16x8x8xf32>
    %27 = vector.shape_cast %24 : vector<16x8xf32> to vector<16x1x8xf32>
    %28 = vector.broadcast %27 : vector<16x1x8xf32> to vector<16x8x8xf32>
    %29 = arith.mulf %28, %25 : vector<16x8x8xf32>
    %cst_17 = arith.constant dense<0.000000e+00> : vector<16x8xf32>
    %30 = vector.multi_reduction <add>, %29, %cst_17 [2] : vector<16x8x8xf32> to vector<16x8xf32>
    %cst_18 = arith.constant 0.353553385 : f32
    %31 = vector.broadcast %cst_18 : f32 to vector<16x8xf32>
    %32 = arith.mulf %30, %31 : vector<16x8xf32>
    %cst_19 = arith.constant dense<0xFF800000> : vector<16xf32>
    %33 = vector.multi_reduction <maximumf>, %32, %cst_19 [1] : vector<16x8xf32> to vector<16xf32>
    %34 = vector.shape_cast %33 : vector<16xf32> to vector<16x1xf32>
    %35 = vector.broadcast %34 : vector<16x1xf32> to vector<16x8xf32>
    %36 = arith.subf %32, %35 : vector<16x8xf32>
    %37 = math.exp %36 : vector<16x8xf32>
    %cst_20 = arith.constant dense<0.000000e+00> : vector<16xf32>
    %38 = vector.multi_reduction <add>, %37, %cst_20 [1] : vector<16x8xf32> to vector<16xf32>
    %39 = vector.shape_cast %38 : vector<16xf32> to vector<16x1xf32>
    %40 = tpu.reciprocal %39 {approx = true} : vector<16x1xf32> -> vector<16x1xf32>
    %41 = vector.broadcast %40 : vector<16x1xf32> to vector<16x8xf32>
    %42 = arith.mulf %37, %41 : vector<16x8xf32>
    %43 = vector.shape_cast %42 : vector<16x8xf32> to vector<16x8x1xf32>
    %44 = vector.broadcast %43 : vector<16x8x1xf32> to vector<16x8x8xf32>
    %45 = arith.mulf %44, %26 : vector<16x8x8xf32>
    %cst_21 = arith.constant dense<0.000000e+00> : vector<16x8xf32>
    %46 = vector.multi_reduction <add>, %45, %cst_21 [1] : vector<16x8x8xf32> to vector<16x8xf32>
    %47 = arith.truncf %46 : vector<16x8xf32> to vector<16x8xbf16>
    %c0_22 = arith.constant 0 : index
    %c0_23 = arith.constant 0 : index
    %c0_24 = arith.constant 0 : index
    %48 = vector.load %arg9[%c0_22, %c0_23, %c0_24] : memref<4x8x32xbf16, #tpu.memory_space<vmem>>, vector<1x8x32xbf16>
    %49 = vector.shape_cast %48 : vector<1x8x32xbf16> to vector<8x32xbf16>
    %cst_25 = arith.constant dense<0.000000e+00> : vector<16x32xf32>
    %50 = tpu.matmul %47, %49, %cst_25 {dimension_numbers = #tpu.dot_dimension_numbers<[1], [0], [0], [1], [0, 0, 1, 1], [], []>} : vector<16x8xbf16>, vector<8x32xbf16>, vector<16x32xf32> -> vector<16x32xf32>
    %51 = arith.addf %23, %50 : vector<16x32xf32>
    %52 = vector.extract_strided_slice %22 {offsets = [0, 8], sizes = [16, 8], strides = [1, 1]} : vector<16x32xf32> to vector<16x8xf32>
    %53 = vector.extract_strided_slice %9 {offsets = [0, 0, 8], sizes = [16, 8, 8], strides = [1, 1, 1]} : vector<16x8x64xf32> to vector<16x8x8xf32>
    %54 = vector.extract_strided_slice %9 {offsets = [0, 0, 40], sizes = [16, 8, 8], strides = [1, 1, 1]} : vector<16x8x64xf32> to vector<16x8x8xf32>
    %55 = vector.shape_cast %52 : vector<16x8xf32> to vector<16x1x8xf32>
    %56 = vector.broadcast %55 : vector<16x1x8xf32> to vector<16x8x8xf32>
    %57 = arith.mulf %56, %53 : vector<16x8x8xf32>
    %cst_26 = arith.constant dense<0.000000e+00> : vector<16x8xf32>
    %58 = vector.multi_reduction <add>, %57, %cst_26 [2] : vector<16x8x8xf32> to vector<16x8xf32>
    %cst_27 = arith.constant 0.353553385 : f32
    %59 = vector.broadcast %cst_27 : f32 to vector<16x8xf32>
    %60 = arith.mulf %58, %59 : vector<16x8xf32>
    %cst_28 = arith.constant dense<0xFF800000> : vector<16xf32>
    %61 = vector.multi_reduction <maximumf>, %60, %cst_28 [1] : vector<16x8xf32> to vector<16xf32>
    %62 = vector.shape_cast %61 : vector<16xf32> to vector<16x1xf32>
    %63 = vector.broadcast %62 : vector<16x1xf32> to vector<16x8xf32>
    %64 = arith.subf %60, %63 : vector<16x8xf32>
    %65 = math.exp %64 : vector<16x8xf32>
    %cst_29 = arith.constant dense<0.000000e+00> : vector<16xf32>
    %66 = vector.multi_reduction <add>, %65, %cst_29 [1] : vector<16x8xf32> to vector<16xf32>
    %67 = vector.shape_cast %66 : vector<16xf32> to vector<16x1xf32>
    %68 = tpu.reciprocal %67 {approx = true} : vector<16x1xf32> -> vector<16x1xf32>
    %69 = vector.broadcast %68 : vector<16x1xf32> to vector<16x8xf32>
    %70 = arith.mulf %65, %69 : vector<16x8xf32>
    %71 = vector.shape_cast %70 : vector<16x8xf32> to vector<16x8x1xf32>
    %72 = vector.broadcast %71 : vector<16x8x1xf32> to vector<16x8x8xf32>
    %73 = arith.mulf %72, %54 : vector<16x8x8xf32>
    %cst_30 = arith.constant dense<0.000000e+00> : vector<16x8xf32>
    %74 = vector.multi_reduction <add>, %73, %cst_30 [1] : vector<16x8x8xf32> to vector<16x8xf32>
    %75 = arith.truncf %74 : vector<16x8xf32> to vector<16x8xbf16>
    %c1 = arith.constant 1 : index
    %c0_31 = arith.constant 0 : index
    %c0_32 = arith.constant 0 : index
    %76 = vector.load %arg9[%c1, %c0_31, %c0_32] : memref<4x8x32xbf16, #tpu.memory_space<vmem>>, vector<1x8x32xbf16>
    %77 = vector.shape_cast %76 : vector<1x8x32xbf16> to vector<8x32xbf16>
    %cst_33 = arith.constant dense<0.000000e+00> : vector<16x32xf32>
    %78 = tpu.matmul %75, %77, %cst_33 {dimension_numbers = #tpu.dot_dimension_numbers<[1], [0], [0], [1], [0, 0, 1, 1], [], []>} : vector<16x8xbf16>, vector<8x32xbf16>, vector<16x32xf32> -> vector<16x32xf32>
    %79 = arith.addf %51, %78 : vector<16x32xf32>
    %80 = vector.extract_strided_slice %22 {offsets = [0, 16], sizes = [16, 8], strides = [1, 1]} : vector<16x32xf32> to vector<16x8xf32>
    %81 = vector.extract_strided_slice %9 {offsets = [0, 0, 16], sizes = [16, 8, 8], strides = [1, 1, 1]} : vector<16x8x64xf32> to vector<16x8x8xf32>
    %82 = vector.extract_strided_slice %9 {offsets = [0, 0, 48], sizes = [16, 8, 8], strides = [1, 1, 1]} : vector<16x8x64xf32> to vector<16x8x8xf32>
    %83 = vector.shape_cast %80 : vector<16x8xf32> to vector<16x1x8xf32>
    %84 = vector.broadcast %83 : vector<16x1x8xf32> to vector<16x8x8xf32>
    %85 = arith.mulf %84, %81 : vector<16x8x8xf32>
    %cst_34 = arith.constant dense<0.000000e+00> : vector<16x8xf32>
    %86 = vector.multi_reduction <add>, %85, %cst_34 [2] : vector<16x8x8xf32> to vector<16x8xf32>
    %cst_35 = arith.constant 0.353553385 : f32
    %87 = vector.broadcast %cst_35 : f32 to vector<16x8xf32>
    %88 = arith.mulf %86, %87 : vector<16x8xf32>
    %cst_36 = arith.constant dense<0xFF800000> : vector<16xf32>
    %89 = vector.multi_reduction <maximumf>, %88, %cst_36 [1] : vector<16x8xf32> to vector<16xf32>
    %90 = vector.shape_cast %89 : vector<16xf32> to vector<16x1xf32>
    %91 = vector.broadcast %90 : vector<16x1xf32> to vector<16x8xf32>
    %92 = arith.subf %88, %91 : vector<16x8xf32>
    %93 = math.exp %92 : vector<16x8xf32>
    %cst_37 = arith.constant dense<0.000000e+00> : vector<16xf32>
    %94 = vector.multi_reduction <add>, %93, %cst_37 [1] : vector<16x8xf32> to vector<16xf32>
    %95 = vector.shape_cast %94 : vector<16xf32> to vector<16x1xf32>
    %96 = tpu.reciprocal %95 {approx = true} : vector<16x1xf32> -> vector<16x1xf32>
    %97 = vector.broadcast %96 : vector<16x1xf32> to vector<16x8xf32>
    %98 = arith.mulf %93, %97 : vector<16x8xf32>
    %99 = vector.shape_cast %98 : vector<16x8xf32> to vector<16x8x1xf32>
    %100 = vector.broadcast %99 : vector<16x8x1xf32> to vector<16x8x8xf32>
    %101 = arith.mulf %100, %82 : vector<16x8x8xf32>
    %cst_38 = arith.constant dense<0.000000e+00> : vector<16x8xf32>
    %102 = vector.multi_reduction <add>, %101, %cst_38 [1] : vector<16x8x8xf32> to vector<16x8xf32>
    %103 = arith.truncf %102 : vector<16x8xf32> to vector<16x8xbf16>
    %c2 = arith.constant 2 : index
    %c0_39 = arith.constant 0 : index
    %c0_40 = arith.constant 0 : index
    %104 = vector.load %arg9[%c2, %c0_39, %c0_40] : memref<4x8x32xbf16, #tpu.memory_space<vmem>>, vector<1x8x32xbf16>
    %105 = vector.shape_cast %104 : vector<1x8x32xbf16> to vector<8x32xbf16>
    %cst_41 = arith.constant dense<0.000000e+00> : vector<16x32xf32>
    %106 = tpu.matmul %103, %105, %cst_41 {dimension_numbers = #tpu.dot_dimension_numbers<[1], [0], [0], [1], [0, 0, 1, 1], [], []>} : vector<16x8xbf16>, vector<8x32xbf16>, vector<16x32xf32> -> vector<16x32xf32>
    %107 = arith.addf %79, %106 : vector<16x32xf32>
    %108 = vector.extract_strided_slice %22 {offsets = [0, 24], sizes = [16, 8], strides = [1, 1]} : vector<16x32xf32> to vector<16x8xf32>
    %109 = vector.extract_strided_slice %9 {offsets = [0, 0, 24], sizes = [16, 8, 8], strides = [1, 1, 1]} : vector<16x8x64xf32> to vector<16x8x8xf32>
    %110 = vector.extract_strided_slice %9 {offsets = [0, 0, 56], sizes = [16, 8, 8], strides = [1, 1, 1]} : vector<16x8x64xf32> to vector<16x8x8xf32>
    %111 = vector.shape_cast %108 : vector<16x8xf32> to vector<16x1x8xf32>
    %112 = vector.broadcast %111 : vector<16x1x8xf32> to vector<16x8x8xf32>
    %113 = arith.mulf %112, %109 : vector<16x8x8xf32>
    %cst_42 = arith.constant dense<0.000000e+00> : vector<16x8xf32>
    %114 = vector.multi_reduction <add>, %113, %cst_42 [2] : vector<16x8x8xf32> to vector<16x8xf32>
    %cst_43 = arith.constant 0.353553385 : f32
    %115 = vector.broadcast %cst_43 : f32 to vector<16x8xf32>
    %116 = arith.mulf %114, %115 : vector<16x8xf32>
    %cst_44 = arith.constant dense<0xFF800000> : vector<16xf32>
    %117 = vector.multi_reduction <maximumf>, %116, %cst_44 [1] : vector<16x8xf32> to vector<16xf32>
    %118 = vector.shape_cast %117 : vector<16xf32> to vector<16x1xf32>
    %119 = vector.broadcast %118 : vector<16x1xf32> to vector<16x8xf32>
    %120 = arith.subf %116, %119 : vector<16x8xf32>
    %121 = math.exp %120 : vector<16x8xf32>
    %cst_45 = arith.constant dense<0.000000e+00> : vector<16xf32>
    %122 = vector.multi_reduction <add>, %121, %cst_45 [1] : vector<16x8xf32> to vector<16xf32>
    %123 = vector.shape_cast %122 : vector<16xf32> to vector<16x1xf32>
    %124 = tpu.reciprocal %123 {approx = true} : vector<16x1xf32> -> vector<16x1xf32>
    %125 = vector.broadcast %124 : vector<16x1xf32> to vector<16x8xf32>
    %126 = arith.mulf %121, %125 : vector<16x8xf32>
    %127 = vector.shape_cast %126 : vector<16x8xf32> to vector<16x8x1xf32>
    %128 = vector.broadcast %127 : vector<16x8x1xf32> to vector<16x8x8xf32>
    %129 = arith.mulf %128, %110 : vector<16x8x8xf32>
    %cst_46 = arith.constant dense<0.000000e+00> : vector<16x8xf32>
    %130 = vector.multi_reduction <add>, %129, %cst_46 [1] : vector<16x8x8xf32> to vector<16x8xf32>
    %131 = arith.truncf %130 : vector<16x8xf32> to vector<16x8xbf16>
    %c3 = arith.constant 3 : index
    %c0_47 = arith.constant 0 : index
    %c0_48 = arith.constant 0 : index
    %132 = vector.load %arg9[%c3, %c0_47, %c0_48] : memref<4x8x32xbf16, #tpu.memory_space<vmem>>, vector<1x8x32xbf16>
    %133 = vector.shape_cast %132 : vector<1x8x32xbf16> to vector<8x32xbf16>
    %cst_49 = arith.constant dense<0.000000e+00> : vector<16x32xf32>
    %134 = tpu.matmul %131, %133, %cst_49 {dimension_numbers = #tpu.dot_dimension_numbers<[1], [0], [0], [1], [0, 0, 1, 1], [], []>} : vector<16x8xbf16>, vector<8x32xbf16>, vector<16x32xf32> -> vector<16x32xf32>
    %135 = arith.addf %107, %134 : vector<16x32xf32>
    %c0_50 = arith.constant 0 : index
    %c0_51 = arith.constant 0 : index
    %136 = vector.load %arg10[%c0_50, %c0_51] : memref<1x32xf32, #tpu.memory_space<vmem>>, vector<1x32xf32>
    %137 = vector.broadcast %136 : vector<1x32xf32> to vector<16x32xf32>
    %138 = arith.addf %135, %137 : vector<16x32xf32>
    %139 = arith.addf %16, %138 : vector<16x32xf32>
    %c0_52 = arith.constant 0 : index
    %c0_53 = arith.constant 0 : index
    %140 = vector.load %arg11[%c0_52, %c0_53] : memref<1x32xf32, #tpu.memory_space<vmem>>, vector<1x32xf32>
    %c0_54 = arith.constant 0 : index
    %c0_55 = arith.constant 0 : index
    %141 = vector.load %arg12[%c0_54, %c0_55] : memref<1x32xf32, #tpu.memory_space<vmem>>, vector<1x32xf32>
    %cst_56 = arith.constant dense<0.000000e+00> : vector<16xf32>
    %142 = vector.multi_reduction <add>, %139, %cst_56 [1] : vector<16x32xf32> to vector<16xf32>
    %143 = vector.shape_cast %142 : vector<16xf32> to vector<16x1xf32>
    %cst_57 = arith.constant 3.200000e+01 : f32
    %144 = vector.broadcast %cst_57 : f32 to vector<16x1xf32>
    %145 = arith.divf %143, %144 : vector<16x1xf32>
    %146 = vector.broadcast %145 : vector<16x1xf32> to vector<16x32xf32>
    %147 = arith.subf %139, %146 : vector<16x32xf32>
    %148 = arith.mulf %147, %147 : vector<16x32xf32>
    %cst_58 = arith.constant dense<0.000000e+00> : vector<16xf32>
    %149 = vector.multi_reduction <add>, %148, %cst_58 [1] : vector<16x32xf32> to vector<16xf32>
    %150 = vector.shape_cast %149 : vector<16xf32> to vector<16x1xf32>
    %cst_59 = arith.constant 3.200000e+01 : f32
    %151 = vector.broadcast %cst_59 : f32 to vector<16x1xf32>
    %152 = arith.divf %150, %151 : vector<16x1xf32>
    %153 = vector.broadcast %145 : vector<16x1xf32> to vector<16x32xf32>
    %154 = arith.subf %139, %153 : vector<16x32xf32>
    %cst_60 = arith.constant 9.99999974E-6 : f32
    %155 = vector.broadcast %cst_60 : f32 to vector<16x1xf32>
    %156 = arith.addf %152, %155 : vector<16x1xf32>
    %157 = math.rsqrt %156 : vector<16x1xf32>
    %158 = vector.broadcast %157 : vector<16x1xf32> to vector<16x32xf32>
    %159 = arith.mulf %154, %158 : vector<16x32xf32>
    %160 = vector.broadcast %140 : vector<1x32xf32> to vector<16x32xf32>
    %161 = arith.mulf %159, %160 : vector<16x32xf32>
    %162 = vector.broadcast %141 : vector<1x32xf32> to vector<16x32xf32>
    %163 = arith.addf %161, %162 : vector<16x32xf32>
    %164 = arith.truncf %163 : vector<16x32xf32> to vector<16x32xbf16>
    %c0_61 = arith.constant 0 : index
    %c0_62 = arith.constant 0 : index
    %165 = vector.load %arg13[%c0_61, %c0_62] : memref<32x2048xbf16, #tpu.memory_space<vmem>>, vector<32x2048xbf16>
    %cst_63 = arith.constant dense<0.000000e+00> : vector<16x2048xf32>
    %166 = tpu.matmul %164, %165, %cst_63 {dimension_numbers = #tpu.dot_dimension_numbers<[1], [0], [0], [1], [0, 0, 1, 1], [], []>} : vector<16x32xbf16>, vector<32x2048xbf16>, vector<16x2048xf32> -> vector<16x2048xf32>
    %c0_64 = arith.constant 0 : index
    %c0_65 = arith.constant 0 : index
    %167 = vector.load %arg14[%c0_64, %c0_65] : memref<1x2048xf32, #tpu.memory_space<vmem>>, vector<1x2048xf32>
    %168 = vector.broadcast %167 : vector<1x2048xf32> to vector<16x2048xf32>
    %169 = arith.addf %166, %168 : vector<16x2048xf32>
    %cst_66 = arith.constant 0.000000e+00 : f32
    %170 = vector.broadcast %cst_66 : f32 to vector<16x2048xf32>
    %171 = arith.maximumf %169, %170 : vector<16x2048xf32>
    %172 = arith.truncf %171 : vector<16x2048xf32> to vector<16x2048xbf16>
    %c0_67 = arith.constant 0 : index
    %c0_68 = arith.constant 0 : index
    %173 = vector.load %arg15[%c0_67, %c0_68] : memref<2048x32xbf16, #tpu.memory_space<vmem>>, vector<2048x32xbf16>
    %cst_69 = arith.constant dense<0.000000e+00> : vector<16x32xf32>
    %174 = tpu.matmul %172, %173, %cst_69 {dimension_numbers = #tpu.dot_dimension_numbers<[1], [0], [0], [1], [0, 0, 1, 1], [], []>} : vector<16x2048xbf16>, vector<2048x32xbf16>, vector<16x32xf32> -> vector<16x32xf32>
    %c0_70 = arith.constant 0 : index
    %c0_71 = arith.constant 0 : index
    %175 = vector.load %arg16[%c0_70, %c0_71] : memref<1x32xf32, #tpu.memory_space<vmem>>, vector<1x32xf32>
    %176 = vector.broadcast %175 : vector<1x32xf32> to vector<16x32xf32>
    %177 = arith.addf %174, %176 : vector<16x32xf32>
    %178 = arith.addf %163, %177 : vector<16x32xf32>
    %c0_72 = arith.constant 0 : index
    %c0_73 = arith.constant 0 : index
    %179 = vector.load %arg17[%c0_72, %c0_73] : memref<1x32xf32, #tpu.memory_space<vmem>>, vector<1x32xf32>
    %c0_74 = arith.constant 0 : index
    %c0_75 = arith.constant 0 : index
    %180 = vector.load %arg18[%c0_74, %c0_75] : memref<1x32xf32, #tpu.memory_space<vmem>>, vector<1x32xf32>
    %cst_76 = arith.constant dense<0.000000e+00> : vector<16xf32>
    %181 = vector.multi_reduction <add>, %178, %cst_76 [1] : vector<16x32xf32> to vector<16xf32>
    %182 = vector.shape_cast %181 : vector<16xf32> to vector<16x1xf32>
    %cst_77 = arith.constant 3.200000e+01 : f32
    %183 = vector.broadcast %cst_77 : f32 to vector<16x1xf32>
    %184 = arith.divf %182, %183 : vector<16x1xf32>
    %185 = vector.broadcast %184 : vector<16x1xf32> to vector<16x32xf32>
    %186 = arith.subf %178, %185 : vector<16x32xf32>
    %187 = arith.mulf %186, %186 : vector<16x32xf32>
    %cst_78 = arith.constant dense<0.000000e+00> : vector<16xf32>
    %188 = vector.multi_reduction <add>, %187, %cst_78 [1] : vector<16x32xf32> to vector<16xf32>
    %189 = vector.shape_cast %188 : vector<16xf32> to vector<16x1xf32>
    %cst_79 = arith.constant 3.200000e+01 : f32
    %190 = vector.broadcast %cst_79 : f32 to vector<16x1xf32>
    %191 = arith.divf %189, %190 : vector<16x1xf32>
    %192 = vector.broadcast %184 : vector<16x1xf32> to vector<16x32xf32>
    %193 = arith.subf %178, %192 : vector<16x32xf32>
    %cst_80 = arith.constant 9.99999974E-6 : f32
    %194 = vector.broadcast %cst_80 : f32 to vector<16x1xf32>
    %195 = arith.addf %191, %194 : vector<16x1xf32>
    %196 = math.rsqrt %195 : vector<16x1xf32>
    %197 = vector.broadcast %196 : vector<16x1xf32> to vector<16x32xf32>
    %198 = arith.mulf %193, %197 : vector<16x32xf32>
    %199 = vector.broadcast %179 : vector<1x32xf32> to vector<16x32xf32>
    %200 = arith.mulf %198, %199 : vector<16x32xf32>
    %201 = vector.broadcast %180 : vector<1x32xf32> to vector<16x32xf32>
    %202 = arith.addf %200, %201 : vector<16x32xf32>
    %c0_81 = arith.constant 0 : index
    %c0_82 = arith.constant 0 : index
    %203 = vector.load %arg2[%c0_81, %c0_82] : memref<16x32xf32, #tpu.memory_space<vmem>>, vector<16x32xf32>
    %204 = arith.addf %202, %203 : vector<16x32xf32>
    %205 = arith.truncf %204 : vector<16x32xf32> to vector<16x32xbf16>
    %c0_83 = arith.constant 0 : index
    %c0_84 = arith.constant 0 : index
    %206 = vector.load %arg19[%c0_83, %c0_84] : memref<32x64xbf16, #tpu.memory_space<vmem>>, vector<32x64xbf16>
    %cst_85 = arith.constant dense<0.000000e+00> : vector<16x64xf32>
    %207 = tpu.matmul %205, %206, %cst_85 {dimension_numbers = #tpu.dot_dimension_numbers<[1], [0], [0], [1], [0, 0, 1, 1], [], []>} : vector<16x32xbf16>, vector<32x64xbf16>, vector<16x64xf32> -> vector<16x64xf32>
    %c0_86 = arith.constant 0 : index
    %c0_87 = arith.constant 0 : index
    %208 = vector.load %arg20[%c0_86, %c0_87] : memref<1x64xf32, #tpu.memory_space<vmem>>, vector<1x64xf32>
    %209 = vector.broadcast %208 : vector<1x64xf32> to vector<16x64xf32>
    %210 = arith.addf %207, %209 : vector<16x64xf32>
    %cst_88 = arith.constant 0.000000e+00 : f32
    %211 = vector.broadcast %cst_88 : f32 to vector<16x64xf32>
    %212 = arith.maximumf %210, %211 : vector<16x64xf32>
    %213 = arith.truncf %212 : vector<16x64xf32> to vector<16x64xbf16>
    %c0_89 = arith.constant 0 : index
    %c0_90 = arith.constant 0 : index
    %214 = vector.load %arg21[%c0_89, %c0_90] : memref<64x1xbf16, #tpu.memory_space<vmem>>, vector<64x1xbf16>
    %cst_91 = arith.constant dense<0.000000e+00> : vector<16x1xf32>
    %215 = tpu.matmul %213, %214, %cst_91 {dimension_numbers = #tpu.dot_dimension_numbers<[1], [0], [0], [1], [0, 0, 1, 1], [], []>} : vector<16x64xbf16>, vector<64x1xbf16>, vector<16x1xf32> -> vector<16x1xf32>
    %c0_92 = arith.constant 0 : index
    %c0_93 = arith.constant 0 : index
    %216 = vector.load %arg22[%c0_92, %c0_93] : memref<1x1xf32, #tpu.memory_space<vmem>>, vector<1x1xf32>
    %217 = vector.broadcast %216 : vector<1x1xf32> to vector<16x1xf32>
    %218 = arith.addf %215, %217 : vector<16x1xf32>
    %c0_94 = arith.constant 0 : index
    %c0_95 = arith.constant 0 : index
    %219 = vector.load %arg23[%c0_94, %c0_95] : memref<16x1xf32, #tpu.memory_space<vmem>>, vector<16x1xf32>
    tpu.vector_store %arg23[%c0_94, %c0_95], %218 {strides = array<i32>} : memref<16x1xf32, #tpu.memory_space<vmem>>, vector<16x1xf32>,
    return
  }
  func.func @transform_0(%arg0: i32) -> (i32, i32, i32) {
    %c0_i32 = arith.constant 0 : i32
    %c0_i32_0 = arith.constant 0 : i32
    %c0_i32_1 = arith.constant 0 : i32
    return %arg0, %c0_i32, %c0_i32_0 : i32, i32, i32
  }
  func.func @transform_1(%arg0: i32) -> (i32, i32) {
    %c0_i32 = arith.constant 0 : i32
    %c0_i32_0 = arith.constant 0 : i32
    return %arg0, %c0_i32 : i32, i32
  }
  func.func @transform_2(%arg0: i32) -> (i32, i32) {
    %c0_i32 = arith.constant 0 : i32
    %c0_i32_0 = arith.constant 0 : i32
    %c0_i32_1 = arith.constant 0 : i32
    return %c0_i32, %c0_i32_0 : i32, i32
  }
  func.func @transform_3(%arg0: i32) -> (i32, i32) {
    %c0_i32 = arith.constant 0 : i32
    %c0_i32_0 = arith.constant 0 : i32
    %c0_i32_1 = arith.constant 0 : i32
    return %c0_i32, %c0_i32_0 : i32, i32
  }
  func.func @transform_4(%arg0: i32) -> (i32, i32) {
    %c0_i32 = arith.constant 0 : i32
    %c0_i32_0 = arith.constant 0 : i32
    %c0_i32_1 = arith.constant 0 : i32
    return %c0_i32, %c0_i32_0 : i32, i32
  }
  func.func @transform_5(%arg0: i32) -> (i32, i32) {
    %c0_i32 = arith.constant 0 : i32
    %c0_i32_0 = arith.constant 0 : i32
    %c0_i32_1 = arith.constant 0 : i32
    return %c0_i32, %c0_i32_0 : i32, i32
  }
  func.func @transform_6(%arg0: i32) -> (i32, i32) {
    %c0_i32 = arith.constant 0 : i32
    %c0_i32_0 = arith.constant 0 : i32
    %c0_i32_1 = arith.constant 0 : i32
    return %c0_i32, %c0_i32_0 : i32, i32
  }
  func.func @transform_7(%arg0: i32) -> (i32, i32) {
    %c0_i32 = arith.constant 0 : i32
    %c0_i32_0 = arith.constant 0 : i32
    %c0_i32_1 = arith.constant 0 : i32
    return %c0_i32, %c0_i32_0 : i32, i32
  }
  func.func @transform_8(%arg0: i32) -> (i32, i32, i32) {
    %c0_i32 = arith.constant 0 : i32
    %c0_i32_0 = arith.constant 0 : i32
    %c0_i32_1 = arith.constant 0 : i32
    %c0_i32_2 = arith.constant 0 : i32
    return %c0_i32, %c0_i32_0, %c0_i32_1 : i32, i32, i32
  }
  func.func @transform_9(%arg0: i32) -> (i32, i32) {
    %c0_i32 = arith.constant 0 : i32
    %c0_i32_0 = arith.constant 0 : i32
    %c0_i32_1 = arith.constant 0 : i32
    return %c0_i32, %c0_i32_0 : i32, i32
  }
  func.func @transform_10(%arg0: i32) -> (i32, i32) {
    %c0_i32 = arith.constant 0 : i32
    %c0_i32_0 = arith.constant 0 : i32
    %c0_i32_1 = arith.constant 0 : i32
    return %c0_i32, %c0_i32_0 : i32, i32
  }
  func.func @transform_11(%arg0: i32) -> (i32, i32) {
    %c0_i32 = arith.constant 0 : i32
    %c0_i32_0 = arith.constant 0 : i32
    %c0_i32_1 = arith.constant 0 : i32
    return %c0_i32, %c0_i32_0 : i32, i32
  }
  func.func @transform_12(%arg0: i32) -> (i32, i32) {
    %c0_i32 = arith.constant 0 : i32
    %c0_i32_0 = arith.constant 0 : i32
    %c0_i32_1 = arith.constant 0 : i32
    return %c0_i32, %c0_i32_0 : i32, i32
  }
  func.func @transform_13(%arg0: i32) -> (i32, i32) {
    %c0_i32 = arith.constant 0 : i32
    %c0_i32_0 = arith.constant 0 : i32
    %c0_i32_1 = arith.constant 0 : i32
    return %c0_i32, %c0_i32_0 : i32, i32
  }
  func.func @transform_14(%arg0: i32) -> (i32, i32) {
    %c0_i32 = arith.constant 0 : i32
    %c0_i32_0 = arith.constant 0 : i32
    %c0_i32_1 = arith.constant 0 : i32
    return %c0_i32, %c0_i32_0 : i32, i32
  }
  func.func @transform_15(%arg0: i32) -> (i32, i32) {
    %c0_i32 = arith.constant 0 : i32
    %c0_i32_0 = arith.constant 0 : i32
    %c0_i32_1 = arith.constant 0 : i32
    return %c0_i32, %c0_i32_0 : i32, i32
  }
  func.func @transform_16(%arg0: i32) -> (i32, i32) {
    %c0_i32 = arith.constant 0 : i32
    %c0_i32_0 = arith.constant 0 : i32
    %c0_i32_1 = arith.constant 0 : i32
    return %c0_i32, %c0_i32_0 : i32, i32
  }
  func.func @transform_17(%arg0: i32) -> (i32, i32) {
    %c0_i32 = arith.constant 0 : i32
    %c0_i32_0 = arith.constant 0 : i32
    %c0_i32_1 = arith.constant 0 : i32
    return %c0_i32, %c0_i32_0 : i32, i32
  }
  func.func @transform_18(%arg0: i32) -> (i32, i32) {
    %c0_i32 = arith.constant 0 : i32
    %c0_i32_0 = arith.constant 0 : i32
    %c0_i32_1 = arith.constant 0 : i32
    return %c0_i32, %c0_i32_0 : i32, i32
  }
  func.func @transform_19(%arg0: i32) -> (i32, i32) {
    %c0_i32 = arith.constant 0 : i32
    %c0_i32_0 = arith.constant 0 : i32
    %c0_i32_1 = arith.constant 0 : i32
    return %c0_i32, %c0_i32_0 : i32, i32
  }
  func.func @transform_20(%arg0: i32) -> (i32, i32) {
    %c0_i32 = arith.constant 0 : i32
    %c0_i32_0 = arith.constant 0 : i32
    %c0_i32_1 = arith.constant 0 : i32
    return %c0_i32, %c0_i32_0 : i32, i32
  }
  func.func @transform_21(%arg0: i32) -> (i32, i32) {
    %c0_i32 = arith.constant 0 : i32
    %c0_i32_0 = arith.constant 0 : i32
    %c0_i32_1 = arith.constant 0 : i32
    return %c0_i32, %c0_i32_0 : i32, i32
  }
  func.func @transform_22(%arg0: i32) -> (i32, i32) {
    %c0_i32 = arith.constant 0 : i32
    %c0_i32_0 = arith.constant 0 : i32
    return %arg0, %c0_i32 : i32, i32
  }
}

module attributes {stable_mosaic.version = 11 : i64} {
  func.func @gcn_value_kernel(%arg0: memref<16x16xf32, #tpu.memory_space<vmem>>, %arg1: memref<16x16xf32, #tpu.memory_space<vmem>>, %arg2: memref<16x32xf32, #tpu.memory_space<vmem>>, %arg3: memref<1x32xf32, #tpu.memory_space<vmem>>, %arg4: memref<32x32xf32, #tpu.memory_space<vmem>>, %arg5: memref<1x32xf32, #tpu.memory_space<vmem>>, %arg6: memref<32x32xf32, #tpu.memory_space<vmem>>, %arg7: memref<1x32xf32, #tpu.memory_space<vmem>>, %arg8: memref<16x32xf32, #tpu.memory_space<vmem>>) attributes {dimension_semantics = [], scalar_prefetch = 0 : i64, scratch_operands = 0 : i64, tpu.core_type = #tpu.core_type<tc>} {
    %c0 = arith.constant 0 : index
    %c0_0 = arith.constant 0 : index
    %0 = vector.load %arg1[%c0, %c0_0] : memref<16x16xf32, #tpu.memory_space<vmem>>, vector<16x16xf32>
    %c0_1 = arith.constant 0 : index
    %c0_2 = arith.constant 0 : index
    %1 = vector.load %arg0[%c0_1, %c0_2] : memref<16x16xf32, #tpu.memory_space<vmem>>, vector<16x16xf32>
    %c0_3 = arith.constant 0 : index
    %c0_4 = arith.constant 0 : index
    %2 = vector.load %arg2[%c0_3, %c0_4] : memref<16x32xf32, #tpu.memory_space<vmem>>, vector<16x32xf32>
    %cst = arith.constant dense<0.000000e+00> : vector<16x32xf32>
    %3 = tpu.matmul %1, %2, %cst {dimension_numbers = #tpu.dot_dimension_numbers<[1], [0], [0], [1], [0, 0, 1, 1], [], []>} : vector<16x16xf32>, vector<16x32xf32>, vector<16x32xf32> -> vector<16x32xf32>
    %cst_5 = arith.constant dense<0.000000e+00> : vector<16x32xf32>
    %4 = tpu.matmul %0, %3, %cst_5 {dimension_numbers = #tpu.dot_dimension_numbers<[1], [0], [0], [1], [0, 0, 1, 1], [], []>} : vector<16x16xf32>, vector<16x32xf32>, vector<16x32xf32> -> vector<16x32xf32>
    %c0_6 = arith.constant 0 : index
    %c0_7 = arith.constant 0 : index
    %5 = vector.load %arg3[%c0_6, %c0_7] : memref<1x32xf32, #tpu.memory_space<vmem>>, vector<1x32xf32>
    %6 = vector.broadcast %5 : vector<1x32xf32> to vector<16x32xf32>
    %7 = arith.addf %4, %6 : vector<16x32xf32>
    %cst_8 = arith.constant 0.000000e+00 : f32
    %8 = vector.broadcast %cst_8 : f32 to vector<16x32xf32>
    %9 = arith.maximumf %7, %8 : vector<16x32xf32>
    %c0_9 = arith.constant 0 : index
    %c0_10 = arith.constant 0 : index
    %10 = vector.load %arg4[%c0_9, %c0_10] : memref<32x32xf32, #tpu.memory_space<vmem>>, vector<32x32xf32>
    %cst_11 = arith.constant dense<0.000000e+00> : vector<16x32xf32>
    %11 = tpu.matmul %9, %10, %cst_11 {dimension_numbers = #tpu.dot_dimension_numbers<[1], [0], [0], [1], [0, 0, 1, 1], [], []>} : vector<16x32xf32>, vector<32x32xf32>, vector<16x32xf32> -> vector<16x32xf32>
    %cst_12 = arith.constant dense<0.000000e+00> : vector<16x32xf32>
    %12 = tpu.matmul %0, %11, %cst_12 {dimension_numbers = #tpu.dot_dimension_numbers<[1], [0], [0], [1], [0, 0, 1, 1], [], []>} : vector<16x16xf32>, vector<16x32xf32>, vector<16x32xf32> -> vector<16x32xf32>
    %c0_13 = arith.constant 0 : index
    %c0_14 = arith.constant 0 : index
    %13 = vector.load %arg5[%c0_13, %c0_14] : memref<1x32xf32, #tpu.memory_space<vmem>>, vector<1x32xf32>
    %14 = vector.broadcast %13 : vector<1x32xf32> to vector<16x32xf32>
    %15 = arith.addf %12, %14 : vector<16x32xf32>
    %cst_15 = arith.constant 0.000000e+00 : f32
    %16 = vector.broadcast %cst_15 : f32 to vector<16x32xf32>
    %17 = arith.maximumf %15, %16 : vector<16x32xf32>
    %c0_16 = arith.constant 0 : index
    %c0_17 = arith.constant 0 : index
    %18 = vector.load %arg6[%c0_16, %c0_17] : memref<32x32xf32, #tpu.memory_space<vmem>>, vector<32x32xf32>
    %cst_18 = arith.constant dense<0.000000e+00> : vector<16x32xf32>
    %19 = tpu.matmul %17, %18, %cst_18 {dimension_numbers = #tpu.dot_dimension_numbers<[1], [0], [0], [1], [0, 0, 1, 1], [], []>} : vector<16x32xf32>, vector<32x32xf32>, vector<16x32xf32> -> vector<16x32xf32>
    %c0_19 = arith.constant 0 : index
    %c0_20 = arith.constant 0 : index
    %20 = vector.load %arg7[%c0_19, %c0_20] : memref<1x32xf32, #tpu.memory_space<vmem>>, vector<1x32xf32>
    %21 = vector.broadcast %20 : vector<1x32xf32> to vector<16x32xf32>
    %22 = arith.addf %19, %21 : vector<16x32xf32>
    %c0_21 = arith.constant 0 : index
    %c0_22 = arith.constant 0 : index
    %23 = vector.load %arg8[%c0_21, %c0_22] : memref<16x32xf32, #tpu.memory_space<vmem>>, vector<16x32xf32>
    tpu.vector_store %arg8[%c0_21, %c0_22], %22 {strides = array<i32>} : memref<16x32xf32, #tpu.memory_space<vmem>>, vector<16x32xf32>,
    return
  }
}

</mosaic_0001>

<bundles_post_ra>
// kernel: mul.1
= control target key start
LH: loop header
LB: loop body
LE: loop exit
PB: predicated region body
PF: predicated region fallthrough
CT: control target
= control target key end

     0   :  { %s34_s0 = inlined_call_operand.vmem [shape: f32[48], index: 0, kind: input, shape index: {}]   ;;  %s35_s1 = inlined_call_operand.vmem [shape: f32[48], index: 1, kind: input, shape index: {}]   ;;  %s36_s2 = inlined_call_operand.vmem [shape: f32[48], index: 2, kind: output, shape index: {}]  }
   0x1   :  { %v3_v0 = vld [vmem:[%s34_s0] sm:$0x1] }
   0x2   :  { %v4_v1 = vld [vmem:[%s35_s1] sm:$0x1] }
   0x3   :  { %v7_v2 = vmul.f32 %v4_v1, %v3_v0 }
   0x5   :  { %9 = vst [vmem:[%s36_s2] sm:$0x1] %v7_v2 }

</bundles_post_ra>
